<compile_context>
chip_gen: v7x
topology: tpu7x:2x2x1
jax: 0.10.0
libtpu: 0.0.40
codegen_flags: <defaults>
</compile_context>

<pallas_src>
import functools
import math

import jax
import jax.numpy as jnp
from jax.experimental import pallas as pl
from jax.experimental.pallas import tpu as pltpu

LANE = 128


def _round_up(x, m):
    return ((x + m - 1) // m) * m


def _cdiv(a, b):
    return (a + b - 1) // b


def _actor_kernel(state_ref, w1_ref, w2_ref, w3_ref, b_ref, out_ref, *,
                  max_action, hidden, a_pad):
    # Fused biases: [b1 | b2 | b3_padded] along the lane axis (f32).
    # Offsets 0 / hidden / 2*hidden are multiples of 128 (hidden == 256), so
    # these slices are lane-aligned views (no VMEM copies).
    b1 = b_ref[:, 0:hidden]
    b2 = b_ref[:, hidden:2 * hidden]
    b3 = b_ref[:, 2 * hidden:2 * hidden + a_pad]

    # Weights are already bf16; only the activations get cast per step.
    x = state_ref[...].astype(jnp.bfloat16)
    h1 = jnp.dot(x, w1_ref[...], preferred_element_type=jnp.float32) + b1
    h1 = jnp.maximum(h1, 0.0)

    h2 = jnp.dot(h1.astype(jnp.bfloat16), w2_ref[...],
                 preferred_element_type=jnp.float32) + b2
    h2 = jnp.maximum(h2, 0.0)

    a = jnp.dot(h2.astype(jnp.bfloat16), w3_ref[...],
                preferred_element_type=jnp.float32) + b3
    # tanh lowers to the EUP slot (otherwise idle); keep the max_action scale
    # inside the kernel (pre-scaling in the wrapper would just be an extra
    # un-hidden XLA op).
    out_ref[...] = (max_action * jnp.tanh(a)).astype(out_ref.dtype)


def _choose_tb(B, block_b):
    """Batch tile: 8-granule for tiny B, 128-aligned for B>=128, and >=2 grid
    steps for B>=256 so the 'parallel' axis can shard over v7x megacore."""
    if B <= 128:
        return min(_round_up(B, 8), 128)
    if B < 256:
        return _round_up(B, 128)
    half = _round_up(_cdiv(B, 2), 128)
    return max(128, min(block_b, half))


@functools.partial(
    jax.jit,
    static_argnames=("max_action", "hidden", "action_dim", "a_pad", "block_b"))
def _actor_forward_jit(state, w1, w2, w3, b, *, max_action, hidden,
                       action_dim, a_pad, block_b):
    B, state_dim = state.shape
    tb = _choose_tb(B, block_b)
    grid = (_cdiv(B, tb),)

    # Same block index every grid step -> weights/biases stay VMEM-resident.
    resident = lambda shape: pl.BlockSpec(shape, lambda i: (0,) * len(shape))

    kernel = functools.partial(_actor_kernel, max_action=max_action,
                               hidden=hidden, a_pad=a_pad)

    out = pl.pallas_call(
        kernel,
        out_shape=jax.ShapeDtypeStruct((B, a_pad), jnp.float32),
        grid=grid,
        in_specs=[
            pl.BlockSpec((tb, state_dim), lambda i: (i, 0)),  # pipelined input
            resident(w1.shape),
            resident(w2.shape),
            resident(w3.shape),
            resident(b.shape),
        ],
        out_specs=pl.BlockSpec((tb, a_pad), lambda i: (i, 0)),
        compiler_params=pltpu.CompilerParams(
            dimension_semantics=("parallel",)),  # v7x: shard batch over 2 TCs
    )(state, w1, w2, w3, b)

    # Lane-dense store inside the kernel; trim the zero-padded action lanes
    # here (fuses into the jitted call).
    return out[:, :action_dim]


def prepare_actor_params(params):
    """One-time prep (amortized across forwards): bf16 weights, lane-padded
    output layer, fused f32 bias vector."""
    hidden = params["w1"].shape[1]
    action_dim = params["w3"].shape[1]
    assert hidden % LANE == 0, "hidden must be a multiple of 128 for lane-aligned bias slices"
    a_pad = _round_up(action_dim, LANE)

    w3p = jnp.pad(params["w3"], ((0, 0), (0, a_pad - action_dim)))
    b3p = jnp.pad(params["b3"], ((0, 0), (0, a_pad - action_dim)))
    biases = jnp.concatenate([params["b1"], params["b2"], b3p],
                             axis=1).astype(jnp.float32)  # (1, 2H + a_pad)

    return {
        "w1": params["w1"].astype(jnp.bfloat16),
        "w2": params["w2"].astype(jnp.bfloat16),
        "w3": w3p.astype(jnp.bfloat16),
        "b": biases,
        "hidden": int(hidden),
        "action_dim": int(action_dim),
        "a_pad": int(a_pad),
    }


def actor_forward(state, prep, max_action, *, block_b=1024):
    """state: (B, state_dim) f32.  prep: output of prepare_actor_params."""
    return _actor_forward_jit(
        state, prep["w1"], prep["w2"], prep["w3"], prep["b"],
        max_action=float(max_action), hidden=prep["hidden"],
        action_dim=prep["action_dim"], a_pad=prep["a_pad"],
        block_b=int(block_b))


def init_actor_params(key, state_dim, action_dim, hidden=256):
    """Mimics PyTorch nn.Linear default init: U(-1/sqrt(fan_in), 1/sqrt(fan_in)).
    Weights stored as (in_features, out_features) so each layer is x @ W + b."""
    def linear(key, fan_in, fan_out):
        kw, kb = jax.random.split(key)
        bound = 1.0 / math.sqrt(fan_in)
        w = jax.random.uniform(kw, (fan_in, fan_out), jnp.float32, -bound, bound)
        b = jax.random.uniform(kb, (1, fan_out), jnp.float32, -bound, bound)
        return w, b

    k1, k2, k3 = jax.random.split(key, 3)
    w1, b1 = linear(k1, state_dim, hidden)
    w2, b2 = linear(k2, hidden, hidden)
    w3, b3 = linear(k3, hidden, action_dim)
    return {"w1": w1, "b1": b1, "w2": w2, "b2": b2, "w3": w3, "b3": b3}


def actor_ref_f32(state, params, max_action):
    """Pure f32 JAX reference (PyTorch semantics)."""
    h1 = jnp.maximum(state @ params["w1"] + params["b1"], 0.0)
    h2 = jnp.maximum(h1 @ params["w2"] + params["b2"], 0.0)
    return max_action * jnp.tanh(h2 @ params["w3"] + params["b3"])


def actor_ref_mixed(state, params, max_action):
    """Reference matching the kernel's bf16-matmul / f32-accumulate precision."""
    bf = jnp.bfloat16
    dot = lambda a, w: jnp.dot(a.astype(bf), w.astype(bf),
                               preferred_element_type=jnp.float32)
    h1 = jnp.maximum(dot(state, params["w1"]) + params["b1"], 0.0)
    h2 = jnp.maximum(dot(h1, params["w2"]) + params["b2"], 0.0)
    return max_action * jnp.tanh(dot(h2, params["w3"]) + params["b3"])


if __name__ == "__main__":
    key = jax.random.PRNGKey(0)
    k_params, k_state1, k_state2 = jax.random.split(key, 3)

    state_dim, action_dim, max_action = 16, 8, 2.0
    params = init_actor_params(k_params, state_dim, action_dim)
    prep = prepare_actor_params(params)

    # Small "action selection" shape (single ragged grid step, 2 valid rows).
    state_small = jax.random.normal(k_state1, (2, state_dim), jnp.float32)
    out_small = jax.block_until_ready(
        actor_forward(state_small, prep, max_action))

    # Larger shape exercising >=2 grid steps (megacore), ragged final block,
    # and resident weights across steps.
    state_big = jax.random.normal(k_state2, (300, state_dim), jnp.float32)
    out_big = jax.block_until_ready(
        actor_forward(state_big, prep, max_action))

    for state, out in ((state_small, out_small), (state_big, out_big)):
        assert out.shape == (state.shape[0], action_dim)
        ref_mixed = actor_ref_mixed(state, params, max_action)
        ref_f32 = actor_ref_f32(state, params, max_action)
        # Exact-semantics check vs. the bf16-matmul/f32-accumulate reference.
        assert jnp.allclose(out, ref_mixed, atol=1e-3, rtol=1e-3)
        # Sanity check vs. the pure-f32 PyTorch-equivalent reference.
        assert jnp.allclose(out, ref_f32, atol=1e-1, rtol=1e-1)
        assert bool(jnp.all(jnp.abs(out) <= max_action + 1e-6))

    print("KERNEL_OK")
</pallas_src>

<mosaic_0001>
module attributes {stable_mosaic.version = 11 : i64} {
  func.func @_actor_kernel(%arg0: i32, %arg1: memref<8x16xf32, #tpu.memory_space<vmem>>, %arg2: memref<16x256xbf16, #tpu.memory_space<vmem>>, %arg3: memref<256x256xbf16, #tpu.memory_space<vmem>>, %arg4: memref<256x128xbf16, #tpu.memory_space<vmem>>, %arg5: memref<1x640xf32, #tpu.memory_space<vmem>>, %arg6: memref<8x128xf32, #tpu.memory_space<vmem>>) attributes {dimension_semantics = [#tpu.dimension_semantics<parallel>], iteration_bounds = array<i64: 1>, scalar_prefetch = 0 : i64, scratch_operands = 0 : i64, tpu.core_type = #tpu.core_type<tc>, window_params = [{transform_indices = @transform_0, window_bounds = array<i64: 8, 16>}, {pipeline_mode = #tpu.pipeline_mode<synchronous>, transform_indices = @transform_1, window_bounds = array<i64: 16, 256>}, {pipeline_mode = #tpu.pipeline_mode<synchronous>, transform_indices = @transform_2, window_bounds = array<i64: 256, 256>}, {pipeline_mode = #tpu.pipeline_mode<synchronous>, transform_indices = @transform_3, window_bounds = array<i64: 256, 128>}, {pipeline_mode = #tpu.pipeline_mode<synchronous>, transform_indices = @transform_4, window_bounds = array<i64: 1, 640>}, {transform_indices = @transform_5, window_bounds = array<i64: 8, 128>}]} {
    %c0 = arith.constant 0 : index
    %c0_0 = arith.constant 0 : index
    %0 = vector.load %arg5[%c0, %c0_0] : memref<1x640xf32, #tpu.memory_space<vmem>>, vector<1x256xf32>
    %c0_1 = arith.constant 0 : index
    %c256 = arith.constant 256 : index
    %1 = vector.load %arg5[%c0_1, %c256] : memref<1x640xf32, #tpu.memory_space<vmem>>, vector<1x256xf32>
    %c0_2 = arith.constant 0 : index
    %c512 = arith.constant 512 : index
    %2 = vector.load %arg5[%c0_2, %c512] : memref<1x640xf32, #tpu.memory_space<vmem>>, vector<1x128xf32>
    %c0_3 = arith.constant 0 : index
    %c0_4 = arith.constant 0 : index
    %3 = vector.load %arg1[%c0_3, %c0_4] : memref<8x16xf32, #tpu.memory_space<vmem>>, vector<8x16xf32>
    %4 = arith.truncf %3 : vector<8x16xf32> to vector<8x16xbf16>
    %c0_5 = arith.constant 0 : index
    %c0_6 = arith.constant 0 : index
    %5 = vector.load %arg2[%c0_5, %c0_6] : memref<16x256xbf16, #tpu.memory_space<vmem>>, vector<16x256xbf16>
    %cst = arith.constant dense<0.000000e+00> : vector<8x256xf32>
    %6 = tpu.matmul %4, %5, %cst {dimension_numbers = #tpu.dot_dimension_numbers<[1], [0], [0], [1], [0, 0, 1, 1], [], []>} : vector<8x16xbf16>, vector<16x256xbf16>, vector<8x256xf32> -> vector<8x256xf32>
    %7 = vector.broadcast %0 : vector<1x256xf32> to vector<8x256xf32>
    %8 = arith.addf %6, %7 : vector<8x256xf32>
    %cst_7 = arith.constant 0.000000e+00 : f32
    %9 = vector.broadcast %cst_7 : f32 to vector<8x256xf32>
    %10 = arith.maximumf %8, %9 : vector<8x256xf32>
    %11 = arith.truncf %10 : vector<8x256xf32> to vector<8x256xbf16>
    %c0_8 = arith.constant 0 : index
    %c0_9 = arith.constant 0 : index
    %12 = vector.load %arg3[%c0_8, %c0_9] : memref<256x256xbf16, #tpu.memory_space<vmem>>, vector<256x256xbf16>
    %cst_10 = arith.constant dense<0.000000e+00> : vector<8x256xf32>
    %13 = tpu.matmul %11, %12, %cst_10 {dimension_numbers = #tpu.dot_dimension_numbers<[1], [0], [0], [1], [0, 0, 1, 1], [], []>} : vector<8x256xbf16>, vector<256x256xbf16>, vector<8x256xf32> -> vector<8x256xf32>
    %14 = vector.broadcast %1 : vector<1x256xf32> to vector<8x256xf32>
    %15 = arith.addf %13, %14 : vector<8x256xf32>
    %cst_11 = arith.constant 0.000000e+00 : f32
    %16 = vector.broadcast %cst_11 : f32 to vector<8x256xf32>
    %17 = arith.maximumf %15, %16 : vector<8x256xf32>
    %18 = arith.truncf %17 : vector<8x256xf32> to vector<8x256xbf16>
    %c0_12 = arith.constant 0 : index
    %c0_13 = arith.constant 0 : index
    %19 = vector.load %arg4[%c0_12, %c0_13] : memref<256x128xbf16, #tpu.memory_space<vmem>>, vector<256x128xbf16>
    %cst_14 = arith.constant dense<0.000000e+00> : vector<8x128xf32>
    %20 = tpu.matmul %18, %19, %cst_14 {dimension_numbers = #tpu.dot_dimension_numbers<[1], [0], [0], [1], [0, 0, 1, 1], [], []>} : vector<8x256xbf16>, vector<256x128xbf16>, vector<8x128xf32> -> vector<8x128xf32>
    %21 = vector.broadcast %2 : vector<1x128xf32> to vector<8x128xf32>
    %22 = arith.addf %20, %21 : vector<8x128xf32>
    %23 = math.tanh %22 : vector<8x128xf32>
    %cst_15 = arith.constant 2.000000e+00 : f32
    %24 = vector.broadcast %cst_15 : f32 to vector<8x128xf32>
    %25 = arith.mulf %24, %23 : vector<8x128xf32>
    %c0_16 = arith.constant 0 : index
    %c0_17 = arith.constant 0 : index
    %26 = vector.load %arg6[%c0_16, %c0_17] : memref<8x128xf32, #tpu.memory_space<vmem>>, vector<8x128xf32>
    tpu.vector_store %arg6[%c0_16, %c0_17], %25 {strides = array<i32>} : memref<8x128xf32, #tpu.memory_space<vmem>>, vector<8x128xf32>,
    return
  }
  func.func @transform_0(%arg0: i32) -> (i32, i32) {
    %c0_i32 = arith.constant 0 : i32
    %c0_i32_0 = arith.constant 0 : i32
    return %arg0, %c0_i32 : i32, i32
  }
  func.func @transform_1(%arg0: i32) -> (i32, i32) {
    %c0_i32 = arith.constant 0 : i32
    %c0_i32_0 = arith.constant 0 : i32
    %c0_i32_1 = arith.constant 0 : i32
    return %c0_i32, %c0_i32_0 : i32, i32
  }
  func.func @transform_2(%arg0: i32) -> (i32, i32) {
    %c0_i32 = arith.constant 0 : i32
    %c0_i32_0 = arith.constant 0 : i32
    %c0_i32_1 = arith.constant 0 : i32
    return %c0_i32, %c0_i32_0 : i32, i32
  }
  func.func @transform_3(%arg0: i32) -> (i32, i32) {
    %c0_i32 = arith.constant 0 : i32
    %c0_i32_0 = arith.constant 0 : i32
    %c0_i32_1 = arith.constant 0 : i32
    return %c0_i32, %c0_i32_0 : i32, i32
  }
  func.func @transform_4(%arg0: i32) -> (i32, i32) {
    %c0_i32 = arith.constant 0 : i32
    %c0_i32_0 = arith.constant 0 : i32
    %c0_i32_1 = arith.constant 0 : i32
    return %c0_i32, %c0_i32_0 : i32, i32
  }
  func.func @transform_5(%arg0: i32) -> (i32, i32) {
    %c0_i32 = arith.constant 0 : i32
    %c0_i32_0 = arith.constant 0 : i32
    return %arg0, %c0_i32 : i32, i32
  }
}

</mosaic_0001>

<bundles_post_ra>
// kernel: _actor_forward_jit.1
= control target key start
LH: loop header
LB: loop body
LE: loop exit
PB: predicated region body
PF: predicated region fallthrough
CT: control target
= control target key end

     0   :  { %10 = vsyncpa [#allocation3], 0  ;;  %s1001_s0 = inlined_call_operand.hbm [shape: f32[2,16], index: 0, kind: input, shape index: {}]   ;;  %s1002_s1 = inlined_call_operand.hbm [shape: bf16[16,256], index: 1, kind: input, shape index: {}]   ;;  %s1003_s2 = inlined_call_operand.hbm [shape: bf16[256,256], index: 2, kind: input, shape index: {}]   ;;  %s1004_s3 = inlined_call_operand.hbm [shape: bf16[256,128], index: 3, kind: input, shape index: {}]   ;;  %s1005_s4 = inlined_call_operand.vmem [shape: f32[1,640], index: 4, kind: input, shape index: {}]   ;;  %s1006_s5 = inlined_call_operand.hbm [shape: f32[2,128], index: 5, kind: output, shape index: {}]  }
   0x1   :  { %11 = vsyncpa [#allocation6], 0 }
   0x2   :  { %12 = vsyncpa [#allocation9], 0 }
   0x3   :  { %13 = vsyncpa [#allocation4], 0 }
   0x4   :  { %18 = vsyncadd [#allocation3], 96  ;;  %s871_s18 = smov [#allocation5]   ;;  %s753_s22 = scalar_lea.hbm %s1002_s1, 256 }
   0x5   :  { %s31_s19 = sshll.u32 %s871_s18, 4  ;;  %p754_p0 = scmp.ne.s32.totalorder %s1002_s1, %s753_s22  ;;  %s32_s19 = int_to_ptr.vmem [resolvable:$true] %s31_s19 }
   0x6   :  { %p757_p1 = scmp.lt.u32.totalorder %s753_s22, %s1002_s1 }
   0x8   :  { %p759_p2 = pnand %p757_p1, %p754_p0 }
   0xa   :  { %762 = shalt.err (!%p759_p2)
}
   0xb   :  { %s763_s27 = scalar_lea.vmem %s32_s19, 256  ;;  %p768_p4 = scmp.lt.s32.totalorder %s32_s19, %s32_s19 }
   0xc   :  { %p764_p3 = scmp.ne.s32.totalorder %s32_s19, %s763_s27  ;;  %p769_p5 = scmp.lt.s32.totalorder %s763_s27, %s763_s27 }
   0xe   :  { %p770_p6 = por %p769_p5, %p768_p4 }
  0x10   :  { %p771_p7 = pnand %p770_p6, %p764_p3 }
  0x12   :  { %774 = shalt.err (!%p771_p7)
}
  0x13   :  { %s872_s28 = smov 128   ;;  %s873_s29 = smov 8  }
  0x14   :  { %37 = dma.hbm_to_vmem [thread:$0]  %s1002_s1, 256, %s32_s19, [#allocation6], %s872_s28, %s872_s28, %s873_s29  }
  0x15   :  { %s874_s7 = smov [#allocation2]   ;;  %s775_s11 = scalar_lea.hbm %s1001_s0, 32 }
  0x16   :  { %s19_s8 = sshll.u32 %s874_s7, 4  ;;  %p776_p8 = scmp.ne.s32.totalorder %s1001_s0, %s775_s11  ;;  %s20_s8 = int_to_ptr.vmem [resolvable:$true] %s19_s8 }
  0x17   :  { %p779_p9 = scmp.lt.u32.totalorder %s775_s11, %s1001_s0 }
  0x19   :  { %p781_p10 = pnand %p779_p9, %p776_p8 }
  0x1b   :  { %784 = shalt.err (!%p781_p10)
}
  0x1c   :  { %s785_s16 = scalar_lea.vmem %s20_s8, 32  ;;  %s789_s1 = scalar_lea.vmem %s20_s8, 128 }
  0x1d   :  { %p786_p11 = scmp.ne.s32.totalorder %s20_s8, %s785_s16  ;;  %p790_p12 = scmp.lt.s32.totalorder %s20_s8, %s20_s8 }
  0x1e   :  { %p791_p13 = scmp.lt.s32.totalorder %s789_s1, %s785_s16 }
  0x20   :  { %p792_p0 = por %p791_p13, %p790_p12 }
  0x22   :  { %p793_p1 = pnand %p792_p0, %p786_p11 }
  0x24   :  { %796 = shalt.err (!%p793_p1)
}
  0x25   :  { %s875_s17 = smov 32   ;;  %s876_s18 = smov 2  }
  0x26   :  { %25 = dma.hbm_to_vmem [thread:$0]  %s1001_s0, 32, %s20_s8, [#allocation3], %s875_s17, %s875_s17, %s876_s18  }
  0x27   :  { %s877_s21 = smov [#allocation7]   ;;  %s878_s23 = smov [#allocation8]  }
  0x28   :  { %s43_s22 = sshll.u32 %s877_s21, 4  ;;  %s55_s24 = sshll.u32 %s878_s23, 4  ;;  %s44_s22 = int_to_ptr.vmem [resolvable:$true] %s43_s22  ;;  %s943_s24 = int_to_ptr.vmem [resolvable:$true] %s55_s24 }
  0x29   :  { %s797_s27 = scalar_lea.hbm %s1003_s2, 4096 }
  0x2a   :  { %p798_p2 = scmp.ne.s32.totalorder %s1003_s2, %s797_s27  ;;  %p801_p3 = scmp.lt.u32.totalorder %s797_s27, %s1003_s2 }
  0x2c   :  { %p803_p4 = pnand %p801_p3, %p798_p2 }
  0x2e   :  { %806 = shalt.err (!%p803_p4)
}
  0x2f   :  { %s807_s0 = scalar_lea.vmem %s44_s22, 4096  ;;  %p812_p6 = scmp.lt.s32.totalorder %s44_s22, %s44_s22 }
  0x30   :  { %p808_p5 = scmp.ne.s32.totalorder %s44_s22, %s807_s0  ;;  %p813_p7 = scmp.lt.s32.totalorder %s807_s0, %s807_s0 }
  0x32   :  { %p814_p8 = por %p813_p7, %p812_p6 }
  0x34   :  { %p815_p9 = pnand %p814_p8, %p808_p5 }
  0x36   :  { %818 = shalt.err (!%p815_p9)
}
  0x37   :  { %49 = dma.hbm_to_vmem [thread:$0]  %s1003_s2, 4096, %s44_s22, [#allocation6], %s872_s28, %s872_s28, %s873_s29  }
  0x38   :  { %s819_s13 = scalar_lea.hbm %s1004_s3, 2048 }
  0x39   :  { %p820_p10 = scmp.ne.s32.totalorder %s1004_s3, %s819_s13  ;;  %p823_p11 = scmp.lt.u32.totalorder %s819_s13, %s1004_s3 }
  0x3b   :  { %p825_p12 = pnand %p823_p11, %p820_p10 }
  0x3d   :  { %828 = shalt.err (!%p825_p12)
}
  0x3e   :  { %s829_s19 = scalar_lea.vmem %s943_s24, 2048  ;;  %p834_p0 = scmp.lt.s32.totalorder %s943_s24, %s943_s24 }
  0x3f   :  { %p830_p13 = scmp.ne.s32.totalorder %s943_s24, %s829_s19  ;;  %p835_p1 = scmp.lt.s32.totalorder %s829_s19, %s829_s19 }
  0x41   :  { %p836_p2 = por %p835_p1, %p834_p0 }
  0x43   :  { %p837_p3 = pnand %p836_p2, %p830_p13 }
  0x45   :  { %840 = shalt.err (!%p837_p3)
}
  0x46   :  { %s879_s2 = smov 64   ;;  %s880_s28 = smov 4  }
  0x47   :  { %61 = dma.hbm_to_vmem [thread:$0]  %s1004_s3, 2048, %s943_s24, [#allocation9], %s879_s2, %s879_s2, %s880_s28  }
  0x48   :  { %863 = dma.done.wait [#allocation3], 128  }
  0x49   :  { %864 = vsyncadd [#allocation3], 4294967168 }
  0x4a   :  { %865 = dma.done.wait [#allocation6], 4352  }
  0x4b   :  { %866 = vsyncadd [#allocation6], 4294962944 }
  0x4c   :  { %867 = dma.done.wait [#allocation9], 2048  }
  0x4d   :  { %868 = vsyncadd [#allocation9], 4294965248  ;;  %v881_v0 = vmov 0   ;;  %v684_v1 = vld [vmem:[#allocation5 + $0x4] ss:$8 sps:$4 sm:$0xff]   ;;  %v80_v3 = vld [vmem:[#allocation2] sm:$0xff]  ;;  %v85_v49 = vlaneseq }
  0x4e   :  { %141 = vmatprep.mubr.bf16.mxu0 %v881_v0  ;;  %v686_v2 = vld [vmem:[#allocation5] ss:$8 sps:$4 sm:$0xff]   ;;  %109 = vmatprep.subr.bf16.mxu0 %v684_v1  ;;  %v81_v4 = vpack.c.bf16 %v80_v3, %v80_v3  ;;  %v687_v5 = vld [vmem:[#allocation7 + $0x4] ss:$8 sps:$4 sm:$0xff]   ;;  %v689_v6 = vld [vmem:[#allocation7] ss:$8 sps:$4 sm:$0xff]  }
  0x4f   :  { %110 = vmatpush1.bf16.msra.mxu0 %v686_v2  ;;  %vm105_vm0 = vcmask 130048   ;;  %v690_v7 = vld [vmem:[#allocation7 + $0x14] ss:$8 sps:$4 sm:$0xff]   ;;  %357 = vmatprep.subr.bf16.mxu1 %v687_v5  ;;  %v692_v8 = vld [vmem:[#allocation7 + $0x10] ss:$8 sps:$4 sm:$0xff]   ;;  %v735_v37 = vld [vmem:[#allocation8 + $0x40] sm:$0xff]  }
  0x50   :  { %358 = vmatpush1.bf16.msra.mxu1 %v689_v6  ;;  %v693_v9 = vld [vmem:[#allocation7 + $0x24] ss:$8 sps:$4 sm:$0xff]   ;;  %v695_v10 = vld [vmem:[#allocation7 + $0x20] ss:$8 sps:$4 sm:$0xff]   ;;  %v696_v11 = vld [vmem:[#allocation7 + $0x34] ss:$8 sps:$4 sm:$0xff]   ;;  %650 = vmatprep.subr.bf16.mxu0 %v735_v37 }
  0x51   :  { %359 = vmatprep.subr.bf16.mxu1 %v690_v7  ;;  %v698_v12 = vld [vmem:[#allocation7 + $0x30] ss:$8 sps:$4 sm:$0xff]   ;;  %v699_v13 = vld [vmem:[#allocation7 + $0x44] ss:$8 sps:$4 sm:$0xff]   ;;  %v701_v14 = vld [vmem:[#allocation7 + $0x40] ss:$8 sps:$4 sm:$0xff]  }
  0x52   :  { %600 = vmatmul.mubr.msk.bf16.vlgmr.msra.gmra.mrb[0].mxu0 %vm105_vm0, %v81_v4  ;;  %v702_v15 = vld [vmem:[#allocation7 + $0x54] ss:$8 sps:$4 sm:$0xff]   ;;  %v704_v16 = vld [vmem:[#allocation7 + $0x50] ss:$8 sps:$4 sm:$0xff]   ;;  %v705_v17 = vld [vmem:[#allocation7 + $0x64] ss:$8 sps:$4 sm:$0xff]  }
  0x53   :  { %v707_v18 = vld [vmem:[#allocation7 + $0x60] ss:$8 sps:$4 sm:$0xff]   ;;  %v708_v19 = vld [vmem:[#allocation7 + $0x74] ss:$8 sps:$4 sm:$0xff]   ;;  %v710_v20 = vld [vmem:[#allocation7 + $0x70] ss:$8 sps:$4 sm:$0xff]  }
  0x54   :  { %360 = vmatpush1.bf16.msra.mxu1 %v692_v8  ;;  %v711_v21 = vld [vmem:[#allocation7 + $0x84] ss:$8 sps:$4 sm:$0xff]   ;;  %v713_v22 = vld [vmem:[#allocation7 + $0x80] ss:$8 sps:$4 sm:$0xff]   ;;  %v714_v23 = vld [vmem:[#allocation7 + $0x94] ss:$8 sps:$4 sm:$0xff]  }
  0x55   :  { %361 = vmatprep.subr.bf16.mxu1 %v693_v9  ;;  %v716_v24 = vld [vmem:[#allocation7 + $0x90] ss:$8 sps:$4 sm:$0xff]   ;;  %v717_v25 = vld [vmem:[#allocation7 + $0xa4] ss:$8 sps:$4 sm:$0xff]   ;;  %v719_v26 = vld [vmem:[#allocation7 + $0xa0] ss:$8 sps:$4 sm:$0xff]  }
  0x56   :  { %v720_v27 = vld [vmem:[#allocation7 + $0xb4] ss:$8 sps:$4 sm:$0xff]   ;;  %v722_v28 = vld [vmem:[#allocation7 + $0xb0] ss:$8 sps:$4 sm:$0xff]   ;;  %v723_v29 = vld [vmem:[#allocation7 + $0xc4] ss:$8 sps:$4 sm:$0xff]  }
  0x57   :  { %v725_v30 = vld [vmem:[#allocation7 + $0xc0] ss:$8 sps:$4 sm:$0xff]   ;;  %v726_v31 = vld [vmem:[#allocation7 + $0xd4] ss:$8 sps:$4 sm:$0xff]   ;;  %v728_v32 = vld [vmem:[#allocation7 + $0xd0] ss:$8 sps:$4 sm:$0xff]  }
  0x58   :  { %362 = vmatpush1.bf16.msra.mxu1 %v695_v10  ;;  %v729_v33 = vld [vmem:[#allocation7 + $0xe4] ss:$8 sps:$4 sm:$0xff]   ;;  %v731_v34 = vld [vmem:[#allocation7 + $0xe0] ss:$8 sps:$4 sm:$0xff]   ;;  %v732_v35 = vld [vmem:[#allocation7 + $0xf4] ss:$8 sps:$4 sm:$0xff]  }
  0x59   :  { %363 = vmatprep.subr.bf16.mxu1 %v696_v11  ;;  %v734_v36 = vld [vmem:[#allocation7 + $0xf0] ss:$8 sps:$4 sm:$0xff]   ;;  %v736_v38 = vld [vmem:[#allocation8] sm:$0xff]   ;;  %v737_v39 = vld [vmem:[#allocation8 + $0x48] sm:$0xff]   ;;  %v86_v50 = vshrl.u32 %v85_v49, 7 }
  0x5a   :  { %651 = vmatpush3.bf16.msra.mxu0 %v736_v38  ;;  %v738_v40 = vld [vmem:[#allocation8 + $0x8] sm:$0xff]   ;;  %v739_v41 = vld [vmem:[#allocation8 + $0x50] sm:$0xff]   ;;  %v741_v43 = vld [vmem:[#allocation8 + $0x58] sm:$0xff]  }
  0x5b   :  { %652 = vmatprep.subr.bf16.mxu0 %v737_v39  ;;  %v740_v42 = vld [vmem:[#allocation8 + $0x10] sm:$0xff]   ;;  %v742_v44 = vld [vmem:[#allocation8 + $0x18] sm:$0xff]   ;;  %v743_v45 = vld [vmem:[#allocation8 + $0x60] sm:$0xff]   ;;  %v87_v51 = vsub.s32 0, %v86_v50  ;;  %v91_v53 = vsub.s32 1, %v86_v50 }
  0x5c   :  { %364 = vmatpush1.bf16.msra.mxu1 %v698_v12  ;;  %v744_v46 = vld [vmem:[#allocation8 + $0x20] sm:$0xff]   ;;  %v745_v47 = vld [vmem:[#allocation8 + $0x68] sm:$0xff]   ;;  %v747_v2 = vld [vmem:[#allocation8 + $0x70] sm:$0xff]  }
  0x5d   :  { %365 = vmatprep.subr.bf16.mxu1 %v699_v13  ;;  %v746_v48 = vld [vmem:[#allocation8 + $0x28] sm:$0xff]   ;;  %v77_v52 = vld [vmem:[%s1005_s4] sm:$0x3]  ;;  %v748_v3 = vld [vmem:[#allocation8 + $0x30] sm:$0xff]  }
  0x5e   :  { %653 = vmatpush3.bf16.msra.mxu0 %v738_v40  ;;  %v88_v54 = vrot.slane %v77_v52, %v87_v51  ;;  %v92_v55 = vrot.slane %v77_v52, %v91_v53  ;;  %v749_v4 = vld [vmem:[#allocation8 + $0x78] sm:$0xff]   ;;  %v78_v6 = vld [vmem:[%s1005_s4 + $0x2] sm:$0x3] }
  0x5f   :  { %654 = vmatprep.subr.bf16.mxu0 %v739_v41  ;;  %v750_v5 = vld [vmem:[#allocation8 + $0x38] sm:$0xff]   ;;  %v190_v7 = vrot.slane %v78_v6, %v87_v51  ;;  %v194_v8 = vrot.slane %v78_v6, %v91_v53 }
  0x60   :  { %366 = vmatpush1.bf16.msra.mxu1 %v701_v14 }
  0x61   :  { %367 = vmatprep.subr.bf16.mxu1 %v702_v15 }
  0x62   :  { %655 = vmatpush3.bf16.msra.mxu0 %v740_v42 }
  0x63   :  { %656 = vmatprep.subr.bf16.mxu0 %v741_v43 }
  0x64   :  { %368 = vmatpush1.bf16.msra.mxu1 %v704_v16 }
  0x65   :  { %369 = vmatprep.subr.bf16.mxu1 %v705_v17 }
  0x66   :  { %657 = vmatpush3.bf16.msra.mxu0 %v742_v44 }
  0x67   :  { %658 = vmatprep.subr.bf16.mxu0 %v743_v45 }
  0x68   :  { %370 = vmatpush1.bf16.msra.mxu1 %v707_v18 }
  0x69   :  { %371 = vmatprep.subr.bf16.mxu1 %v708_v19 }
  0x6a   :  { %659 = vmatpush3.bf16.msra.mxu0 %v744_v46 }
  0x6b   :  { %660 = vmatprep.subr.bf16.mxu0 %v745_v47 }
  0x6c   :  { %372 = vmatpush1.bf16.msra.mxu1 %v710_v20  ;;  %v633_v20 = vld [vmem:[%s1005_s4 + $0x4] ss:$0 sm:$0xff] }
  0x6d   :  { %373 = vmatprep.subr.bf16.mxu1 %v711_v21 }
  0x6e   :  { %661 = vmatpush3.bf16.msra.mxu0 %v746_v48 }
  0x6f   :  { %662 = vmatprep.subr.bf16.mxu0 %v747_v2 }
  0x70   :  { %374 = vmatpush1.bf16.msra.mxu1 %v713_v22 }
  0x71   :  { %375 = vmatprep.subr.bf16.mxu1 %v714_v23 }
  0x72   :  { %663 = vmatpush3.bf16.msra.mxu0 %v748_v3 }
  0x73   :  { %664 = vmatprep.subr.bf16.mxu0 %v749_v4 }
  0x74   :  { %376 = vmatpush1.bf16.msra.mxu1 %v716_v24 }
  0x75   :  { %377 = vmatprep.subr.bf16.mxu1 %v717_v25 }
  0x76   :  { %665 = vmatpush3.bf16.msra.mxu0 %v750_v5 }
  0x78   :  { %378 = vmatpush1.bf16.msra.mxu1 %v719_v26 }
  0x79   :  { %379 = vmatprep.subr.bf16.mxu1 %v720_v27 }
  0x7c   :  { %380 = vmatpush1.bf16.msra.mxu1 %v722_v28 }
  0x7d   :  { %381 = vmatprep.subr.bf16.mxu1 %v723_v29 }
  0x80   :  { %382 = vmatpush1.bf16.msra.mxu1 %v725_v30 }
  0x81   :  { %383 = vmatprep.subr.bf16.mxu1 %v726_v31 }
  0x84   :  { %384 = vmatpush1.bf16.msra.mxu1 %v728_v32 }
  0x85   :  { %385 = vmatprep.subr.bf16.mxu1 %v729_v33 }
  0x88   :  { %386 = vmatpush1.bf16.msra.mxu1 %v731_v34 }
  0x89   :  { %387 = vmatprep.subr.bf16.mxu1 %v732_v35 }
  0x8c   :  { %388 = vmatpush1.bf16.msra.mxu1 %v734_v36 }
 0x125   :  { %v143_v56 = vpop.f32.mrb[0].mxu0 }
 0x126   :  { %v144_v57 = vadd.f32 %v143_v56, %v88_v54  ;;  %v145_v58 = vpop.f32.mrb[1].mxu0 }
 0x127   :  { %v146_v59 = vadd.f32 %v145_v58, %v92_v55  ;;  %v147_v60 = vpop.f32.mrb[2].mxu0 }
 0x128   :  { %v150_v61 = vmax.f32 %v144_v57, 0.0  ;;  %v148_v62 = vpop.f32.mrb[3].mxu0 }
 0x129   :  { %v151_v63 = vmax.f32 %v146_v59, 0.0 }
 0x12a   :  { %v152_v1 = vpack.c.bf16 %v150_v61, %v150_v61 }
 0x12b   :  { %v153_v0 = vpack.c.bf16 %v151_v63, %v151_v63 }
 0x12d   :  { %389 = vmatprep.mubr.bf16.mxu1 %v153_v0 }
 0x12e   :  { %390 = vmatmul.mubr.bf16.vlgmr.msra.gmra.mrb[0].mxu1 %v152_v1 }
 0x201   :  { %v391_v9 = vpop.f32.mrb[0].mxu1 }
 0x202   :  { %v392_v10 = vadd.f32 %v391_v9, %v190_v7  ;;  %v393_v11 = vpop.f32.mrb[1].mxu1 }
 0x203   :  { %v394_v12 = vadd.f32 %v393_v11, %v194_v8  ;;  %v395_v13 = vpop.f32.mrb[2].mxu1 }
 0x204   :  { %v398_v14 = vmax.f32 %v392_v10, 0.0  ;;  %v396_v15 = vpop.f32.mrb[3].mxu1 }
 0x205   :  { %v399_v16 = vmax.f32 %v394_v12, 0.0 }
 0x206   :  { %v400_v18 = vpack.c.bf16 %v398_v14, %v398_v14 }
 0x207   :  { %v401_v17 = vpack.c.bf16 %v399_v16, %v399_v16 }
 0x209   :  { %568 = vmatprep.mubr.bf16.mxu0 %v401_v17 }
 0x20a   :  { %569 = vmatmul.mubr.bf16.vlgmr.msra.gmra.mrb[4].mxu0 %v400_v18 }
 0x2dd   :  { %v666_v19 = vpop.f32.mrb[4].mxu0 }
 0x2de   :  { %v667_v21 = vpop.f32.mrb[5].mxu0 }
 0x2df   :  { %v668_v22 = vadd.f32 %v667_v21, %v666_v19  ;;  %v669_v23 = vpop.f32.mrb[6].mxu0 }
 0x2e0   :  { %v670_v24 = vpop.f32.mrb[7].mxu0 }
 0x2e1   :  { %v571_v25 = vadd.f32 %v668_v22, %v633_v20 }
 0x2e3   :  { %751 = vtanh.f32 %v571_v25 }
 0x2ed   :  { %v752_v26 = vpop.eup %751 }
 0x2ee   :  { %v577_v27 = vmul.f32 2.0, %v752_v26 }
 0x2f0   :  { %578 = vst [vmem:[#allocation10] sm:$0xff] %v577_v27 }
 0x2f1   :  { %583 = vsyncadd [#allocation4], 96  ;;  %s882_s26 = smov [#allocation10]  }
 0x2f2   :  { %s584_s27 = sshll.u32 %s882_s26, 4  ;;  %s585_s27 = int_to_ptr.vmem [resolvable:$true] %s584_s27 }
 0x2f3   :  { %s841_s30 = scalar_lea.vmem %s585_s27, 32  ;;  %s845_s6 = scalar_lea.vmem %s585_s27, 128 }
 0x2f4   :  { %p842_p4 = scmp.ne.s32.totalorder %s585_s27, %s841_s30  ;;  %p846_p5 = scmp.lt.s32.totalorder %s585_s27, %s585_s27 }
 0x2f5   :  { %p847_p6 = scmp.lt.s32.totalorder %s845_s6, %s841_s30 }
 0x2f7   :  { %p848_p7 = por %p847_p6, %p846_p5 }
 0x2f9   :  { %p849_p8 = pnand %p848_p7, %p842_p4 }
 0x2fb   :  { %852 = shalt.err (!%p849_p8)
}
 0x2fc   :  { %s853_s9 = scalar_lea.hbm %s1006_s5, 32 }
 0x2fd   :  { %p854_p9 = scmp.ne.s32.totalorder %s1006_s5, %s853_s9  ;;  %p857_p10 = scmp.lt.u32.totalorder %s853_s9, %s1006_s5 }
 0x2ff   :  { %p859_p11 = pnand %p857_p10, %p854_p9 }
 0x301   :  { %862 = shalt.err (!%p859_p11)
}
 0x302   :  { %590 = dma.vmem_to_hbm [thread:$0]  %s585_s27, 32, %s1006_s5, [#allocation4], %s875_s17, %s875_s17, %s876_s18  }
 0x303   :  { %869 = dma.done.wait [#allocation4], 128  }
 0x304   :  { %870 = vsyncadd [#allocation4], 4294967168 }
 0x305   :  { %594 = vsyncpa [#allocation3], 1 }
 0x306   :  { %595 = vsyncpa [#allocation6], 1 }
 0x307   :  { %596 = vsyncpa [#allocation9], 1 }
 0x308   :  { %597 = vsyncpa [#allocation4], 1 }

</bundles_post_ra>
